<compile_context>
chip_gen: v7x
topology: tpu7x:2x2x1
jax: 0.10.0
libtpu: 0.0.40
codegen_flags: <defaults>
</compile_context>

<pallas_src>
import jax
import jax.numpy as jnp
from jax.experimental import pallas as pl
from jax.experimental.pallas import tpu as pltpu


def make_kan_net_kernel(D, B, M):
    def kan_net_kernel(x_ref, w1_ref, w2_ref, w3_ref, o_ref):
        # x_ref : (B, M)       input batch
        # w1_ref: (D, M, K1)   layer-1 coeffs
        # w2_ref: (D, K1, K2)  layer-2 coeffs
        # w3_ref: (D, K2, K3)  output-layer coeffs
        # o_ref : (D, B, K3)   broadcast-matmul output (per-d slices independent)
        x = jnp.broadcast_to(x_ref[...], (D, B, M))  # shared lhs for every d
        h1 = jnp.einsum('dbm,dmk->dbk', x, w1_ref[...],
                        preferred_element_type=jnp.float32)
        h1 = jnp.maximum(h1, 0.0)
        h2 = jnp.einsum('dbk,dkl->dbl', h1, w2_ref[...],
                        preferred_element_type=jnp.float32)
        h2 = jnp.maximum(h2, 0.0)
        out = jnp.einsum('dbk,dkl->dbl', h2, w3_ref[...],
                         preferred_element_type=jnp.float32)
        o_ref[...] = out.astype(o_ref.dtype)

    return kan_net_kernel


def adaptive_kan_network(x, w1, w2, w3):
    """Pallas implementation of AdaptiveKANNetwork.forward.

    x  : (B, input_size)
    wN : (in_size, out_size, num_knots) coeffs of layer N
    returns (in_size, B, num_knots), matching torch.matmul broadcasting.
    """
    B, M = x.shape
    D, M1, K1 = w1.shape
    D2, M2, K2 = w2.shape
    D3, M3, K3 = w3.shape
    # The broadcasting-matmul chain in the torch module only type-checks under these:
    assert M == M1, (M, M1)
    assert D == D2 == D3, (D, D2, D3)
    assert K1 == M2 and K2 == M3, (K1, M2, K2, M3)

    flops = 2 * D * B * (M * K1 + K1 * K2 + K2 * K3)
    bytes_accessed = 4 * (x.size + w1.size + w2.size + w3.size + D * B * K3)

    return pl.pallas_call(
        make_kan_net_kernel(D, B, M),
        out_shape=jax.ShapeDtypeStruct((D, B, K3), x.dtype),
        in_specs=[pl.BlockSpec(memory_space=pltpu.MemorySpace.VMEM)] * 4,
        out_specs=pl.BlockSpec(memory_space=pltpu.MemorySpace.VMEM),
        cost_estimate=pl.CostEstimate(
            flops=flops, transcendentals=0, bytes_accessed=bytes_accessed),
    )(x, w1, w2, w3)


if __name__ == "__main__":
    # Module config implied by the forward's broadcasting constraints (all dims == num_knots).
    B = 2
    input_size, hidden_sizes, output_size, num_knots = 10, [10, 10], 10, 10

    key = jax.random.PRNGKey(0)
    kx, k1, k2, k3 = jax.random.split(key, 4)

    x = jax.random.normal(kx, (B, input_size), dtype=jnp.float32)
    # Deterministic parameter init (coeffs ~ randn, as nn.Parameter(torch.randn(...)));
    # the `knots` linspace parameter exists in the module but is unused in forward.
    w1 = jax.random.normal(k1, (input_size, hidden_sizes[0], num_knots), dtype=jnp.float32)
    w2 = jax.random.normal(k2, (hidden_sizes[0], hidden_sizes[1], num_knots), dtype=jnp.float32)
    w3 = jax.random.normal(k3, (hidden_sizes[1], output_size, num_knots), dtype=jnp.float32)

    out = adaptive_kan_network(x, w1, w2, w3)
    out = jax.block_until_ready(out)

    # Pure-JAX reference using the same (numpy == torch) matmul broadcasting rules.
    h = x
    for w in (w1, w2):
        h = jnp.maximum(jnp.matmul(h, w), 0.0)
    ref = jnp.matmul(h, w3)

    assert out.shape == ref.shape, (out.shape, ref.shape)
    assert jnp.allclose(out, ref, atol=1e-4, rtol=1e-4), "mismatch vs JAX reference"
    print("KERNEL_OK")
</pallas_src>

<mosaic_0001>
module attributes {stable_mosaic.version = 11 : i64} {
  func.func @kan_net_kernel(%arg0: memref<2x10xf32, #tpu.memory_space<vmem>>, %arg1: memref<10x10x10xf32, #tpu.memory_space<vmem>>, %arg2: memref<10x10x10xf32, #tpu.memory_space<vmem>>, %arg3: memref<10x10x10xf32, #tpu.memory_space<vmem>>, %arg4: memref<10x2x10xf32, #tpu.memory_space<vmem>>) attributes {dimension_semantics = [], scalar_prefetch = 0 : i64, scratch_operands = 0 : i64, tpu.core_type = #tpu.core_type<tc>} {
    %c0 = arith.constant 0 : index
    %c0_0 = arith.constant 0 : index
    %0 = vector.load %arg0[%c0, %c0_0] : memref<2x10xf32, #tpu.memory_space<vmem>>, vector<2x10xf32>
    %1 = vector.shape_cast %0 : vector<2x10xf32> to vector<1x2x10xf32>
    %2 = vector.broadcast %1 : vector<1x2x10xf32> to vector<10x2x10xf32>
    %c0_1 = arith.constant 0 : index
    %c0_2 = arith.constant 0 : index
    %c0_3 = arith.constant 0 : index
    %3 = vector.load %arg1[%c0_1, %c0_2, %c0_3] : memref<10x10x10xf32, #tpu.memory_space<vmem>>, vector<10x10x10xf32>
    "tpu.trace_start"() <{level = 10 : i32, message = "dbm,dmk->dbk"}> : () -> ()
    %cst = arith.constant dense<0.000000e+00> : vector<10x2x10xf32>
    %4 = tpu.matmul %2, %3, %cst {dimension_numbers = #tpu.dot_dimension_numbers<[2], [1], [1], [2], [0, 0, 0, 1, 1, 2], [0], [0]>} : vector<10x2x10xf32>, vector<10x10x10xf32>, vector<10x2x10xf32> -> vector<10x2x10xf32>
    "tpu.trace_stop"() : () -> ()
    %cst_4 = arith.constant 0.000000e+00 : f32
    %5 = vector.broadcast %cst_4 : f32 to vector<10x2x10xf32>
    %6 = arith.maximumf %4, %5 : vector<10x2x10xf32>
    %c0_5 = arith.constant 0 : index
    %c0_6 = arith.constant 0 : index
    %c0_7 = arith.constant 0 : index
    %7 = vector.load %arg2[%c0_5, %c0_6, %c0_7] : memref<10x10x10xf32, #tpu.memory_space<vmem>>, vector<10x10x10xf32>
    "tpu.trace_start"() <{level = 10 : i32, message = "dbk,dkl->dbl"}> : () -> ()
    %cst_8 = arith.constant dense<0.000000e+00> : vector<10x2x10xf32>
    %8 = tpu.matmul %6, %7, %cst_8 {dimension_numbers = #tpu.dot_dimension_numbers<[2], [1], [1], [2], [0, 0, 0, 1, 1, 2], [0], [0]>} : vector<10x2x10xf32>, vector<10x10x10xf32>, vector<10x2x10xf32> -> vector<10x2x10xf32>
    "tpu.trace_stop"() : () -> ()
    %cst_9 = arith.constant 0.000000e+00 : f32
    %9 = vector.broadcast %cst_9 : f32 to vector<10x2x10xf32>
    %10 = arith.maximumf %8, %9 : vector<10x2x10xf32>
    %c0_10 = arith.constant 0 : index
    %c0_11 = arith.constant 0 : index
    %c0_12 = arith.constant 0 : index
    %11 = vector.load %arg3[%c0_10, %c0_11, %c0_12] : memref<10x10x10xf32, #tpu.memory_space<vmem>>, vector<10x10x10xf32>
    "tpu.trace_start"() <{level = 10 : i32, message = "dbk,dkl->dbl"}> : () -> ()
    %cst_13 = arith.constant dense<0.000000e+00> : vector<10x2x10xf32>
    %12 = tpu.matmul %10, %11, %cst_13 {dimension_numbers = #tpu.dot_dimension_numbers<[2], [1], [1], [2], [0, 0, 0, 1, 1, 2], [0], [0]>} : vector<10x2x10xf32>, vector<10x10x10xf32>, vector<10x2x10xf32> -> vector<10x2x10xf32>
    "tpu.trace_stop"() : () -> ()
    %c0_14 = arith.constant 0 : index
    %c0_15 = arith.constant 0 : index
    %c0_16 = arith.constant 0 : index
    %13 = vector.load %arg4[%c0_14, %c0_15, %c0_16] : memref<10x2x10xf32, #tpu.memory_space<vmem>>, vector<10x2x10xf32>
    tpu.vector_store %arg4[%c0_14, %c0_15, %c0_16], %12 {strides = array<i32>} : memref<10x2x10xf32, #tpu.memory_space<vmem>>, vector<10x2x10xf32>,
    return
  }
}

</mosaic_0001>

<bundles_post_ra>
// kernel: tpu_custom_call.1
= control target key start
LH: loop header
LB: loop body
LE: loop exit
PB: predicated region body
PF: predicated region fallthrough
CT: control target
= control target key end

     0   :  { %9 = vsyncpa [#allocation3], 0  ;;  %s3349_s0 = inlined_call_operand.hbm [shape: f32[2,10], index: 0, kind: input, shape index: {}]   ;;  %s3350_s1 = inlined_call_operand.hbm [shape: f32[10,10,10], index: 1, kind: input, shape index: {}]   ;;  %s3351_s2 = inlined_call_operand.hbm [shape: f32[10,10,10], index: 2, kind: input, shape index: {}]   ;;  %s3352_s3 = inlined_call_operand.hbm [shape: f32[10,10,10], index: 3, kind: input, shape index: {}]   ;;  %s3353_s4 = inlined_call_operand.hbm [shape: f32[10,2,10], index: 4, kind: output, shape index: {}]  }
   0x1   :  { %10 = vsyncpa [#allocation6], 0 }
   0x2   :  { %11 = vsyncpa [#allocation9], 0 }
   0x3   :  { %12 = vsyncpa [#allocation4], 0  ;;  %s3048_s15 = smov [#allocation5]   ;;  %s2930_s19 = scalar_lea.hbm %s3350_s1, 2560 }
   0x4   :  { %s28_s16 = sshll.u32 %s3048_s15, 4  ;;  %p2931_p0 = scmp.ne.s32.totalorder %s3350_s1, %s2930_s19  ;;  %s29_s16 = int_to_ptr.vmem [resolvable:$true] %s28_s16 }
   0x5   :  { %p2934_p1 = scmp.lt.u32.totalorder %s2930_s19, %s3350_s1 }
   0x7   :  { %p2936_p2 = pnand %p2934_p1, %p2931_p0 }
   0x9   :  { %2939 = shalt.err (!%p2936_p2)
}
   0xa   :  { %s2940_s24 = scalar_lea.vmem %s29_s16, 2560  ;;  %p2945_p4 = scmp.lt.s32.totalorder %s29_s16, %s29_s16 }
   0xb   :  { %p2941_p3 = scmp.ne.s32.totalorder %s29_s16, %s2940_s24  ;;  %p2946_p5 = scmp.lt.s32.totalorder %s2940_s24, %s2940_s24 }
   0xd   :  { %p2947_p6 = por %p2946_p5, %p2945_p4 }
   0xf   :  { %p2948_p7 = pnand %p2947_p6, %p2941_p3 }
  0x11   :  { %2951 = shalt.err (!%p2948_p7)
}
  0x12   :  { %s3049_s25 = smov 128   ;;  %s3050_s26 = smov 8  }
  0x13   :  { %34 = dma.hbm_to_vmem [thread:$0]  %s3350_s1, 2560, %s29_s16, [#allocation6], %s3049_s25, %s3049_s25, %s3050_s26  }
  0x14   :  { %s3051_s29 = smov [#allocation2]   ;;  %s3052_s5 = smov [#allocation7]  }
  0x15   :  { %s19_s30 = sshll.u32 %s3051_s29, 4  ;;  %s40_s6 = sshll.u32 %s3052_s5, 4  ;;  %s20_s30 = int_to_ptr.vmem [resolvable:$true] %s19_s30  ;;  %s41_s6 = int_to_ptr.vmem [resolvable:$true] %s40_s6 }
  0x16   :  { %s2952_s9 = scalar_lea.hbm %s3349_s0, 32 }
  0x17   :  { %p2953_p8 = scmp.ne.s32.totalorder %s3349_s0, %s2952_s9  ;;  %p2956_p9 = scmp.lt.u32.totalorder %s2952_s9, %s3349_s0 }
  0x19   :  { %p2958_p10 = pnand %p2956_p9, %p2953_p8 }
  0x1b   :  { %2961 = shalt.err (!%p2958_p10)
}
  0x1c   :  { %s2962_s1 = scalar_lea.vmem %s20_s30, 32  ;;  %p2967_p12 = scmp.lt.s32.totalorder %s20_s30, %s20_s30 }
  0x1d   :  { %p2963_p11 = scmp.ne.s32.totalorder %s20_s30, %s2962_s1  ;;  %p2968_p13 = scmp.lt.s32.totalorder %s2962_s1, %s2962_s1 }
  0x1f   :  { %p2969_p0 = por %p2968_p13, %p2967_p12 }
  0x21   :  { %p2970_p1 = pnand %p2969_p0, %p2963_p11 }
  0x23   :  { %2973 = shalt.err (!%p2970_p1)
}
  0x24   :  { %22 = dma.hbm_to_vmem [thread:$0]  %s3349_s0, 32, %s20_s30, [#allocation3]  }
  0x25   :  { %s2974_s18 = scalar_lea.hbm %s3351_s2, 2560 }
  0x26   :  { %p2975_p2 = scmp.ne.s32.totalorder %s3351_s2, %s2974_s18  ;;  %p2978_p3 = scmp.lt.u32.totalorder %s2974_s18, %s3351_s2 }
  0x28   :  { %p2980_p4 = pnand %p2978_p3, %p2975_p2 }
  0x2a   :  { %2983 = shalt.err (!%p2980_p4)
}
  0x2b   :  { %s2984_s23 = scalar_lea.vmem %s41_s6, 2560  ;;  %p2989_p6 = scmp.lt.s32.totalorder %s41_s6, %s41_s6 }
  0x2c   :  { %p2985_p5 = scmp.ne.s32.totalorder %s41_s6, %s2984_s23  ;;  %p2990_p7 = scmp.lt.s32.totalorder %s2984_s23, %s2984_s23 }
  0x2e   :  { %p2991_p8 = por %p2990_p7, %p2989_p6 }
  0x30   :  { %p2992_p9 = pnand %p2991_p8, %p2985_p5 }
  0x32   :  { %2995 = shalt.err (!%p2992_p9)
}
  0x33   :  { %46 = dma.hbm_to_vmem [thread:$0]  %s3351_s2, 2560, %s41_s6, [#allocation6], %s3049_s25, %s3049_s25, %s3050_s26  }
  0x34   :  { %s3053_s27 = smov [#allocation8]   ;;  %s2996_s5 = scalar_lea.hbm %s3352_s3, 2560 }
  0x35   :  { %s52_s28 = sshll.u32 %s3053_s27, 4  ;;  %p2997_p10 = scmp.ne.s32.totalorder %s3352_s3, %s2996_s5  ;;  %s53_s28 = int_to_ptr.vmem [resolvable:$true] %s52_s28 }
  0x36   :  { %p3000_p11 = scmp.lt.u32.totalorder %s2996_s5, %s3352_s3 }
  0x38   :  { %p3002_p12 = pnand %p3000_p11, %p2997_p10 }
  0x3a   :  { %3005 = shalt.err (!%p3002_p12)
}
  0x3b   :  { %s3006_s11 = scalar_lea.vmem %s53_s28, 2560  ;;  %p3011_p0 = scmp.lt.s32.totalorder %s53_s28, %s53_s28 }
  0x3c   :  { %p3007_p13 = scmp.ne.s32.totalorder %s53_s28, %s3006_s11  ;;  %p3012_p1 = scmp.lt.s32.totalorder %s3006_s11, %s3006_s11 }
  0x3e   :  { %p3013_p2 = por %p3012_p1, %p3011_p0 }
  0x40   :  { %p3014_p3 = pnand %p3013_p2, %p3007_p13 }
  0x42   :  { %3017 = shalt.err (!%p3014_p3)
}
  0x43   :  { %58 = dma.hbm_to_vmem [thread:$0]  %s3352_s3, 2560, %s53_s28, [#allocation9], %s3049_s25, %s3049_s25, %s3050_s26  }
  0x44   :  { %3040 = dma.done.wait [#allocation3], 32  }
  0x45   :  { %3041 = vsyncadd [#allocation3], 4294967264 }
  0x46   :  { %3042 = dma.done.wait [#allocation6], 5120  }
  0x47   :  { %3043 = vsyncadd [#allocation6], 4294962176 }
  0x48   :  { %3044 = dma.done.wait [#allocation9], 2560  }
  0x49   :  { %3045 = vsyncadd [#allocation9], 4294964736  ;;  %v3054_v0 = vmov 0.0|0.0   ;;  %vm3055_vm0 = vmmov 0   ;;  %v3056_v1 = vmov 0.0   ;;  %vm96_vm1 = vcmask 1041408  }
  0x4a   :  { %2797 = vmatprep.subr.bf16.mxu0 %v3054_v0  ;;  %2801 = vmatprep.subr.bf16.mxu1 %v3054_v0  ;;  %vm3057_vm2 = vmmov 1   ;;  %v72_v3 = vld [vmem:[#allocation5] sm:$0xff]  ;;  %v73_v4 = vld [vmem:[#allocation5 + $0x8] sm:$0x3]  ;;  %v74_v5 = vld [vmem:[#allocation5 + $0x10] sm:$0xff]  ;;  %vm92_vm4 = vcmask 80896  }
  0x4b   :  { %2591 = vmatprep.mubr.msk.f32.mxu0 %vm3055_vm0, %v3056_v1  ;;  %2598 = vmatprep.mubr.msk.f32.mxu1 %vm3055_vm0, %v3056_v1  ;;  %vm3149_vm3 = vmpackc.low %vm96_vm1, %vm3057_vm2  ;;  %v2798_v6 = vpack.c.bf16 %v73_v4, %v72_v3  ;;  %v75_v7 = vld [vmem:[#allocation5 + $0x18] sm:$0x3]  ;;  %v76_v8 = vld [vmem:[#allocation5 + $0x20] sm:$0xff]  ;;  %vm2407_vm5 = vcmask 74752   ;;  %s3058_s3 = smov [#allocation10]  }
  0x4c   :  { %v2802_v9 = vpack.c.bf16 %v75_v7, %v74_v5  ;;  %v77_v10 = vld [vmem:[#allocation5 + $0x28] sm:$0x3]  ;;  %v78_v11 = vld [vmem:[#allocation5 + $0x30] sm:$0xff]  ;;  %v79_v12 = vld [vmem:[#allocation5 + $0x38] sm:$0x3]  ;;  %s2423_s25 = sshll.u32 %s3058_s3, 4  ;;  %s2424_s25 = int_to_ptr.vmem [resolvable:$true] %s2423_s25 }
  0x4d   :  { %2800 = vmatpush3.bf16.msk.msra.mxu0 %vm3149_vm3, %v2798_v6  ;;  %v71_v13 = vld [vmem:[#allocation2] sm:$0x3]  ;;  %v2806_v14 = vpack.c.bf16 %v77_v10, %v76_v8  ;;  %v2810_v15 = vpack.c.bf16 %v79_v12, %v78_v11  ;;  %v80_v16 = vld [vmem:[#allocation5 + $0x40] sm:$0xff]  ;;  %v81_v17 = vld [vmem:[#allocation5 + $0x48] sm:$0x3]  ;;  %s3018_s26 = scalar_lea.vmem %s2424_s25, 320  ;;  %p3023_p5 = scmp.lt.s32.totalorder %s2424_s25, %s2424_s25 }
  0x4e   :  { %2804 = vmatpush3.bf16.msk.msra.mxu1 %vm3149_vm3, %v2802_v9  ;;  %2805 = vmatprep.subr.bf16.mxu0 %v3054_v0  ;;  %v82_v18 = vld [vmem:[#allocation5 + $0x50] sm:$0xff]  ;;  %v83_v19 = vld [vmem:[#allocation5 + $0x58] sm:$0x3]  ;;  %v2814_v20 = vpack.c.bf16 %v81_v17, %v80_v16  ;;  %v84_v22 = vld [vmem:[#allocation5 + $0x60] sm:$0xff]  ;;  %p3019_p4 = scmp.ne.s32.totalorder %s2424_s25, %s3018_s26  ;;  %p3024_p6 = scmp.lt.s32.totalorder %s3018_s26, %s3018_s26 }
  0x4f   :  { %2809 = vmatprep.subr.bf16.mxu1 %v3054_v0  ;;  %v2818_v21 = vpack.c.bf16 %v83_v19, %v82_v18  ;;  %v85_v23 = vld [vmem:[#allocation5 + $0x68] sm:$0x3]  ;;  %v86_v24 = vld [vmem:[#allocation5 + $0x70] sm:$0xff]  ;;  %v87_v25 = vld [vmem:[#allocation5 + $0x78] sm:$0x3] }
  0x50   :  { %2592 = vmatmul.mubr.msk.f32.vlgmr.msra.gmra.mrb[0].mxu0 %vm92_vm4, %v71_v13  ;;  %v2822_v26 = vpack.c.bf16 %v85_v23, %v84_v22  ;;  %v2826_v27 = vpack.c.bf16 %v87_v25, %v86_v24  ;;  %v88_v28 = vld [vmem:[#allocation5 + $0x80] sm:$0xff]  ;;  %v89_v29 = vld [vmem:[#allocation5 + $0x88] sm:$0x3]  ;;  %v90_v30 = vld [vmem:[#allocation5 + $0x90] sm:$0xff]  ;;  %p3025_p7 = por %p3024_p6, %p3023_p5 }
  0x51   :  { %2599 = vmatmul.mubr.msk.f32.vlgmr.msra.gmra.mrb[0].mxu1 %vm92_vm4, %v71_v13  ;;  %2808 = vmatpush3.bf16.msk.msra.mxu0 %vm3149_vm3, %v2806_v14  ;;  %v91_v31 = vld [vmem:[#allocation5 + $0x98] sm:$0x3]  ;;  %v2830_v32 = vpack.c.bf16 %v89_v29, %v88_v28  ;;  %v837_v34 = vld [vmem:[#allocation7] sm:$0xff]  ;;  %v838_v35 = vld [vmem:[#allocation7 + $0x8] sm:$0x3] }
  0x52   :  { %2812 = vmatpush3.bf16.msk.msra.mxu1 %vm3149_vm3, %v2810_v15  ;;  %2605 = vmatprep.mubr.msk.f32.mxu0 %vm3055_vm0, %v3056_v1  ;;  %v2834_v33 = vpack.c.bf16 %v91_v31, %v90_v30  ;;  %v839_v36 = vld [vmem:[#allocation7 + $0x10] sm:$0xff]  ;;  %v2838_v37 = vpack.c.bf16 %v838_v35, %v837_v34  ;;  %v840_v38 = vld [vmem:[#allocation7 + $0x18] sm:$0x3]  ;;  %v841_v40 = vld [vmem:[#allocation7 + $0x20] sm:$0xff]  ;;  %p3026_p8 = pnand %p3025_p7, %p3019_p4 }
  0x53   :  { %2612 = vmatprep.mubr.msk.f32.mxu1 %vm3055_vm0, %v3056_v1  ;;  %2813 = vmatprep.subr.bf16.mxu0 %v3054_v0  ;;  %v2842_v39 = vpack.c.bf16 %v840_v38, %v839_v36  ;;  %v842_v41 = vld [vmem:[#allocation7 + $0x28] sm:$0x3]  ;;  %v843_v42 = vld [vmem:[#allocation7 + $0x30] sm:$0xff]  ;;  %v844_v43 = vld [vmem:[#allocation7 + $0x38] sm:$0x3] }
  0x54   :  { %2606 = vmatmul.mubr.msk.f32.vlgmr.msra.gmra.mrb[2].mxu0 %vm92_vm4, %v71_v13  ;;  %2817 = vmatprep.subr.bf16.mxu1 %v3054_v0  ;;  %v2846_v45 = vpack.c.bf16 %v842_v41, %v841_v40  ;;  %v2850_v49 = vpack.c.bf16 %v844_v43, %v843_v42  ;;  %v845_v50 = vld [vmem:[#allocation7 + $0x40] sm:$0xff]  ;;  %v846_v51 = vld [vmem:[#allocation7 + $0x48] sm:$0x3]  ;;  %v847_v54 = vld [vmem:[#allocation7 + $0x50] sm:$0xff] }
  0x55   :  { %2613 = vmatmul.mubr.msk.f32.vlgmr.msra.gmra.mrb[2].mxu1 %vm92_vm4, %v71_v13  ;;  %2816 = vmatpush3.bf16.msk.msra.mxu0 %vm3149_vm3, %v2814_v20  ;;  %v848_v55 = vld [vmem:[#allocation7 + $0x58] sm:$0x3]  ;;  %v2854_v57 = vpack.c.bf16 %v846_v51, %v845_v50  ;;  %v849_v62 = vld [vmem:[#allocation7 + $0x60] sm:$0xff]  ;;  %v850_v63 = vld [vmem:[#allocation7 + $0x68] sm:$0x3] }
  0x56   :  { %2820 = vmatpush3.bf16.msk.msra.mxu1 %vm3149_vm3, %v2818_v21  ;;  %2619 = vmatprep.mubr.msk.f32.mxu0 %vm3055_vm0, %v3056_v1  ;;  %v2858_v61 = vpack.c.bf16 %v848_v55, %v847_v54  ;;  %v851_v5 = vld [vmem:[#allocation7 + $0x70] sm:$0xff]  ;;  %v852_v6 = vld [vmem:[#allocation7 + $0x78] sm:$0x3]  ;;  %v2862_v8 = vpack.c.bf16 %v850_v63, %v849_v62  ;;  %v854_v14 = vld [vmem:[#allocation7 + $0x88] sm:$0x3] }
  0x57   :  { %2626 = vmatprep.mubr.msk.f32.mxu1 %vm3055_vm0, %v3056_v1  ;;  %2821 = vmatprep.subr.bf16.mxu0 %v3054_v0  ;;  %v2866_v12 = vpack.c.bf16 %v852_v6, %v851_v5  ;;  %v855_v17 = vld [vmem:[#allocation7 + $0x90] sm:$0xff]  ;;  %v856_v18 = vld [vmem:[#allocation7 + $0x98] sm:$0x3]  ;;  %v1628_v34 = vld [vmem:[#allocation8 + $0x8] sm:$0x3] }
  0x58   :  { %2620 = vmatmul.mubr.msk.f32.vlgmr.msra.gmra.mrb[4].mxu0 %vm92_vm4, %v71_v13  ;;  %2825 = vmatprep.subr.bf16.mxu1 %v3054_v0  ;;  %v2874_v24 = vpack.c.bf16 %v856_v18, %v855_v17  ;;  %v1629_v35 = vld [vmem:[#allocation8 + $0x10] sm:$0xff]  ;;  %v1632_v40 = vld [vmem:[#allocation8 + $0x28] sm:$0x3]  ;;  %v1634_v42 = vld [vmem:[#allocation8 + $0x38] sm:$0x3] }
  0x59   :  { %2627 = vmatmul.mubr.msk.f32.vlgmr.msra.gmra.mrb[4].mxu1 %vm92_vm4, %v71_v13  ;;  %2824 = vmatpush3.bf16.msk.msra.mxu0 %vm3149_vm3, %v2822_v26  ;;  %v1633_v41 = vld [vmem:[#allocation8 + $0x30] sm:$0xff]  ;;  %v1636_v50 = vld [vmem:[#allocation8 + $0x48] sm:$0x3]  ;;  %v1638_v54 = vld [vmem:[#allocation8 + $0x58] sm:$0x3] }
  0x5a   :  { %2828 = vmatpush3.bf16.msk.msra.mxu1 %vm3149_vm3, %v2826_v27  ;;  %2633 = vmatprep.mubr.msk.f32.mxu0 %vm3055_vm0, %v3056_v1  ;;  %v1640_v62 = vld [vmem:[#allocation8 + $0x68] sm:$0x3]  ;;  %v1642_v5 = vld [vmem:[#allocation8 + $0x78] sm:$0x3] }
  0x5b   :  { %2640 = vmatprep.mubr.msk.f32.mxu1 %vm3055_vm0, %v3056_v1  ;;  %2829 = vmatprep.subr.bf16.mxu0 %v3054_v0  ;;  %v1646_v17 = vld [vmem:[#allocation8 + $0x98] sm:$0x3] }
  0x5c   :  { %2634 = vmatmul.mubr.msk.f32.vlgmr.msra.gmra.mrb[6].mxu0 %vm92_vm4, %v71_v13  ;;  %2833 = vmatprep.subr.bf16.mxu1 %v3054_v0 }
  0x5d   :  { %2641 = vmatmul.mubr.msk.f32.vlgmr.msra.gmra.mrb[6].mxu1 %vm92_vm4, %v71_v13  ;;  %2832 = vmatpush3.bf16.msk.msra.mxu0 %vm3149_vm3, %v2830_v32 }
  0x5e   :  { %2836 = vmatpush3.bf16.msk.msra.mxu1 %vm3149_vm3, %v2834_v33  ;;  %2647 = vmatprep.mubr.msk.f32.mxu0 %vm3055_vm0, %v3056_v1  ;;  %v1627_v33 = vld [vmem:[#allocation8] sm:$0xff] }
  0x5f   :  { %2654 = vmatprep.mubr.msk.f32.mxu1 %vm3055_vm0, %v3056_v1  ;;  %2837 = vmatprep.subr.bf16.mxu0 %v3054_v0  ;;  %v2878_v36 = vpack.c.bf16 %v1628_v34, %v1627_v33 }
  0x60   :  { %2648 = vmatmul.mubr.msk.f32.vlgmr.msra.gmra.mrb[8].mxu0 %vm92_vm4, %v71_v13  ;;  %2841 = vmatprep.subr.bf16.mxu1 %v3054_v0 }
  0x61   :  { %2655 = vmatmul.mubr.msk.f32.vlgmr.msra.gmra.mrb[8].mxu1 %vm92_vm4, %v71_v13  ;;  %2661 = vmatprep.mubr.msk.f32.mxu0 %vm3055_vm0, %v3056_v1  ;;  %v853_v13 = vld [vmem:[#allocation7 + $0x80] sm:$0xff] }
  0x62   :  { %2668 = vmatprep.mubr.msk.f32.mxu1 %vm3055_vm0, %v3056_v1  ;;  %2840 = vmatpush3.bf16.msk.msra.mxu0 %vm3149_vm3, %v2838_v37  ;;  %v2870_v20 = vpack.c.bf16 %v854_v14, %v853_v13  ;;  %v1630_v37 = vld [vmem:[#allocation8 + $0x18] sm:$0x3]  ;;  %v1644_v13 = vld [vmem:[#allocation8 + $0x88] sm:$0x3] }
  0x63   :  { %2844 = vmatpush3.bf16.msk.msra.mxu1 %vm3149_vm3, %v2842_v39  ;;  %2845 = vmatprep.subr.bf16.mxu0 %v3054_v0  ;;  %v2882_v38 = vpack.c.bf16 %v1630_v37, %v1629_v35  ;;  %v1631_v39 = vld [vmem:[#allocation8 + $0x20] sm:$0xff] }
  0x64   :  { %2849 = vmatprep.subr.bf16.mxu1 %v3054_v0 }
 0x123   :  { %v166_v44 = vpop.f32.mrb[0].mxu0 }
 0x124   :  { %v827_v46 = vmax.f32 %v166_v44, 0.0  ;;  %v239_v47 = vpop.f32.mrb[0].mxu1  ;;  %v2593_v48 = vpop.f32.mrb[1].mxu0  ;;  %v2886_v44 = vpack.c.bf16 %v1632_v40, %v1631_v39 }
 0x125   :  { %v828_v52 = vmax.f32 %v239_v47, 0.0  ;;  %v2600_v53 = vpop.f32.mrb[1].mxu1  ;;  %v2890_v48 = vpack.c.bf16 %v1634_v42, %v1633_v41 }
 0x126   :  { %2662 = vmatmul.mubr.msk.f32.vlgmr.msra.gmra.mrb[10].mxu0 %vm92_vm4, %v827_v46  ;;  %v1637_v53 = vld [vmem:[#allocation8 + $0x50] sm:$0xff] }
 0x127   :  { %2669 = vmatmul.mubr.msk.f32.vlgmr.msra.gmra.mrb[10].mxu1 %vm92_vm4, %v828_v52  ;;  %v312_v56 = vpop.f32.mrb[2].mxu0  ;;  %2848 = vmatpush3.bf16.msk.msra.mxu0 %vm3149_vm3, %v2846_v45 }
 0x128   :  { %v829_v58 = vmax.f32 %v312_v56, 0.0  ;;  %v385_v59 = vpop.f32.mrb[2].mxu1  ;;  %2852 = vmatpush3.bf16.msk.msra.mxu1 %vm3149_vm3, %v2850_v49  ;;  %v2607_v60 = vpop.f32.mrb[3].mxu0  ;;  %2675 = vmatprep.mubr.msk.f32.mxu0 %vm3055_vm0, %v3056_v1  ;;  %v1635_v49 = vld [vmem:[#allocation8 + $0x40] sm:$0xff] }
 0x129   :  { %v830_v3 = vmax.f32 %v385_v59, 0.0  ;;  %v2614_v4 = vpop.f32.mrb[3].mxu1  ;;  %2682 = vmatprep.mubr.msk.f32.mxu1 %vm3055_vm0, %v3056_v1  ;;  %2853 = vmatprep.subr.bf16.mxu0 %v3054_v0  ;;  %v2894_v56 = vpack.c.bf16 %v1636_v50, %v1635_v49  ;;  %v2898_v60 = vpack.c.bf16 %v1638_v54, %v1637_v53 }
 0x12a   :  { %2676 = vmatmul.mubr.msk.f32.vlgmr.msra.gmra.mrb[12].mxu0 %vm92_vm4, %v829_v58  ;;  %2857 = vmatprep.subr.bf16.mxu1 %v3054_v0  ;;  %v1641_v4 = vld [vmem:[#allocation8 + $0x70] sm:$0xff] }
 0x12b   :  { %2683 = vmatmul.mubr.msk.f32.vlgmr.msra.gmra.mrb[12].mxu1 %vm92_vm4, %v830_v3  ;;  %v458_v7 = vpop.f32.mrb[4].mxu0  ;;  %2856 = vmatpush3.bf16.msk.msra.mxu0 %vm3149_vm3, %v2854_v57 }
 0x12c   :  { %v831_v9 = vmax.f32 %v458_v7, 0.0  ;;  %v531_v10 = vpop.f32.mrb[4].mxu1  ;;  %2860 = vmatpush3.bf16.msk.msra.mxu1 %vm3149_vm3, %v2858_v61  ;;  %v2621_v11 = vpop.f32.mrb[5].mxu0  ;;  %2689 = vmatprep.mubr.msk.f32.mxu0 %vm3055_vm0, %v3056_v1  ;;  %v1639_v61 = vld [vmem:[#allocation8 + $0x60] sm:$0xff] }
 0x12d   :  { %v832_v15 = vmax.f32 %v531_v10, 0.0  ;;  %v2628_v16 = vpop.f32.mrb[5].mxu1  ;;  %2696 = vmatprep.mubr.msk.f32.mxu1 %vm3055_vm0, %v3056_v1  ;;  %2861 = vmatprep.subr.bf16.mxu0 %v3054_v0  ;;  %v2902_v7 = vpack.c.bf16 %v1640_v62, %v1639_v61  ;;  %v2906_v11 = vpack.c.bf16 %v1642_v5, %v1641_v4 }
 0x12e   :  { %2690 = vmatmul.mubr.msk.f32.vlgmr.msra.gmra.mrb[14].mxu0 %vm92_vm4, %v831_v9  ;;  %2865 = vmatprep.subr.bf16.mxu1 %v3054_v0  ;;  %v1645_v16 = vld [vmem:[#allocation8 + $0x90] sm:$0xff] }
 0x12f   :  { %2697 = vmatmul.mubr.msk.f32.vlgmr.msra.gmra.mrb[14].mxu1 %vm92_vm4, %v832_v15  ;;  %v604_v19 = vpop.f32.mrb[6].mxu0  ;;  %2864 = vmatpush3.bf16.msk.msra.mxu0 %vm3149_vm3, %v2862_v8 }
 0x130   :  { %v833_v21 = vmax.f32 %v604_v19, 0.0  ;;  %v677_v22 = vpop.f32.mrb[6].mxu1  ;;  %2868 = vmatpush3.bf16.msk.msra.mxu1 %vm3149_vm3, %v2866_v12  ;;  %v2635_v23 = vpop.f32.mrb[7].mxu0  ;;  %2703 = vmatprep.mubr.msk.f32.mxu0 %vm3055_vm0, %v3056_v1  ;;  %v1643_v12 = vld [vmem:[#allocation8 + $0x80] sm:$0xff] }
 0x131   :  { %v834_v25 = vmax.f32 %v677_v22, 0.0  ;;  %v2642_v26 = vpop.f32.mrb[7].mxu1  ;;  %2710 = vmatprep.mubr.msk.f32.mxu1 %vm3055_vm0, %v3056_v1  ;;  %2869 = vmatprep.subr.bf16.mxu0 %v3054_v0  ;;  %v2910_v19 = vpack.c.bf16 %v1644_v13, %v1643_v12  ;;  %v2914_v23 = vpack.c.bf16 %v1646_v17, %v1645_v16 }
 0x132   :  { %2704 = vmatmul.mubr.msk.f32.vlgmr.msra.gmra.mrb[16].mxu0 %vm92_vm4, %v833_v21  ;;  %2873 = vmatprep.subr.bf16.mxu1 %v3054_v0 }
 0x133   :  { %2711 = vmatmul.mubr.msk.f32.vlgmr.msra.gmra.mrb[16].mxu1 %vm92_vm4, %v834_v25  ;;  %v750_v27 = vpop.f32.mrb[8].mxu0  ;;  %2872 = vmatpush3.bf16.msk.msra.mxu0 %vm3149_vm3, %v2870_v20 }
 0x134   :  { %v835_v28 = vmax.f32 %v750_v27, 0.0  ;;  %v823_v29 = vpop.f32.mrb[8].mxu1  ;;  %2876 = vmatpush3.bf16.msk.msra.mxu1 %vm3149_vm3, %v2874_v24  ;;  %v2649_v30 = vpop.f32.mrb[9].mxu0  ;;  %2717 = vmatprep.mubr.msk.f32.mxu0 %vm3055_vm0, %v3056_v1 }
 0x135   :  { %v836_v31 = vmax.f32 %v823_v29, 0.0  ;;  %v2656_v32 = vpop.f32.mrb[9].mxu1  ;;  %2724 = vmatprep.mubr.msk.f32.mxu1 %vm3055_vm0, %v3056_v1  ;;  %2877 = vmatprep.subr.bf16.mxu0 %v3054_v0 }
 0x136   :  { %2718 = vmatmul.mubr.msk.f32.vlgmr.msra.gmra.mrb[18].mxu0 %vm92_vm4, %v835_v28  ;;  %2881 = vmatprep.subr.bf16.mxu1 %v3054_v0 }
 0x137   :  { %2725 = vmatmul.mubr.msk.f32.vlgmr.msra.gmra.mrb[18].mxu1 %vm92_vm4, %v836_v31  ;;  %2731 = vmatprep.mubr.msk.f32.mxu0 %vm3055_vm0, %v3056_v1 }
 0x138   :  { %2738 = vmatprep.mubr.msk.f32.mxu1 %vm3055_vm0, %v3056_v1  ;;  %2880 = vmatpush3.bf16.msk.msra.mxu0 %vm3149_vm3, %v2878_v36 }
 0x139   :  { %2884 = vmatpush3.bf16.msk.msra.mxu1 %vm3149_vm3, %v2882_v38  ;;  %2885 = vmatprep.subr.bf16.mxu0 %v3054_v0 }
 0x13a   :  { %2889 = vmatprep.subr.bf16.mxu1 %v3054_v0 }
 0x1f9   :  { %v929_v43 = vpop.f32.mrb[10].mxu0 }
 0x1fa   :  { %v1617_v45 = vmax.f32 %v929_v43, 0.0  ;;  %v1005_v46 = vpop.f32.mrb[10].mxu1  ;;  %v2663_v47 = vpop.f32.mrb[11].mxu0 }
 0x1fb   :  { %v1618_v51 = vmax.f32 %v1005_v46, 0.0  ;;  %v2670_v52 = vpop.f32.mrb[11].mxu1 }
 0x1fc   :  { %2732 = vmatmul.mubr.msk.f32.vlgmr.msra.gmra.mrb[20].mxu0 %vm92_vm4, %v1617_v45 }
 0x1fd   :  { %2739 = vmatmul.mubr.msk.f32.vlgmr.msra.gmra.mrb[20].mxu1 %vm92_vm4, %v1618_v51  ;;  %v1081_v55 = vpop.f32.mrb[12].mxu0  ;;  %2888 = vmatpush3.bf16.msk.msra.mxu0 %vm3149_vm3, %v2886_v44 }
 0x1fe   :  { %v1619_v57 = vmax.f32 %v1081_v55, 0.0  ;;  %v1157_v58 = vpop.f32.mrb[12].mxu1  ;;  %2892 = vmatpush3.bf16.msk.msra.mxu1 %vm3149_vm3, %v2890_v48  ;;  %v2677_v59 = vpop.f32.mrb[13].mxu0  ;;  %2745 = vmatprep.mubr.msk.f32.mxu0 %vm3055_vm0, %v3056_v1 }
 0x1ff   :  { %v1620_v63 = vmax.f32 %v1157_v58, 0.0  ;;  %v2684_v3 = vpop.f32.mrb[13].mxu1  ;;  %2752 = vmatprep.mubr.msk.f32.mxu1 %vm3055_vm0, %v3056_v1  ;;  %2893 = vmatprep.subr.bf16.mxu0 %v3054_v0 }
 0x200   :  { %2746 = vmatmul.mubr.msk.f32.vlgmr.msra.gmra.mrb[22].mxu0 %vm92_vm4, %v1619_v57  ;;  %2897 = vmatprep.subr.bf16.mxu1 %v3054_v0 }
 0x201   :  { %2753 = vmatmul.mubr.msk.f32.vlgmr.msra.gmra.mrb[22].mxu1 %vm92_vm4, %v1620_v63  ;;  %v1233_v6 = vpop.f32.mrb[14].mxu0  ;;  %2896 = vmatpush3.bf16.msk.msra.mxu0 %vm3149_vm3, %v2894_v56 }
 0x202   :  { %v1621_v8 = vmax.f32 %v1233_v6, 0.0  ;;  %v1309_v9 = vpop.f32.mrb[14].mxu1  ;;  %2900 = vmatpush3.bf16.msk.msra.mxu1 %vm3149_vm3, %v2898_v60  ;;  %v2691_v10 = vpop.f32.mrb[15].mxu0  ;;  %2759 = vmatprep.mubr.msk.f32.mxu0 %vm3055_vm0, %v3056_v1 }
 0x203   :  { %v1622_v14 = vmax.f32 %v1309_v9, 0.0  ;;  %v2698_v15 = vpop.f32.mrb[15].mxu1  ;;  %2766 = vmatprep.mubr.msk.f32.mxu1 %vm3055_vm0, %v3056_v1  ;;  %2901 = vmatprep.subr.bf16.mxu0 %v3054_v0 }
 0x204   :  { %2760 = vmatmul.mubr.msk.f32.vlgmr.msra.gmra.mrb[24].mxu0 %vm92_vm4, %v1621_v8  ;;  %2905 = vmatprep.subr.bf16.mxu1 %v3054_v0 }
 0x205   :  { %2767 = vmatmul.mubr.msk.f32.vlgmr.msra.gmra.mrb[24].mxu1 %vm92_vm4, %v1622_v14  ;;  %v1385_v18 = vpop.f32.mrb[16].mxu0  ;;  %2904 = vmatpush3.bf16.msk.msra.mxu0 %vm3149_vm3, %v2902_v7 }
 0x206   :  { %v1623_v20 = vmax.f32 %v1385_v18, 0.0  ;;  %v1461_v21 = vpop.f32.mrb[16].mxu1  ;;  %2908 = vmatpush3.bf16.msk.msra.mxu1 %vm3149_vm3, %v2906_v11  ;;  %v2705_v22 = vpop.f32.mrb[17].mxu0  ;;  %2773 = vmatprep.mubr.msk.f32.mxu0 %vm3055_vm0, %v3056_v1 }
 0x207   :  { %v1624_v24 = vmax.f32 %v1461_v21, 0.0  ;;  %v2712_v25 = vpop.f32.mrb[17].mxu1  ;;  %2780 = vmatprep.mubr.msk.f32.mxu1 %vm3055_vm0, %v3056_v1  ;;  %2909 = vmatprep.subr.bf16.mxu0 %v3054_v0 }
 0x208   :  { %2774 = vmatmul.mubr.msk.f32.vlgmr.msra.gmra.mrb[26].mxu0 %vm92_vm4, %v1623_v20  ;;  %2913 = vmatprep.subr.bf16.mxu1 %v3054_v0 }
 0x209   :  { %2781 = vmatmul.mubr.msk.f32.vlgmr.msra.gmra.mrb[26].mxu1 %vm92_vm4, %v1624_v24  ;;  %v1537_v26 = vpop.f32.mrb[18].mxu0  ;;  %2912 = vmatpush3.bf16.msk.msra.mxu0 %vm3149_vm3, %v2910_v19 }
 0x20a   :  { %v1625_v27 = vmax.f32 %v1537_v26, 0.0  ;;  %v1613_v28 = vpop.f32.mrb[18].mxu1  ;;  %2916 = vmatpush3.bf16.msk.msra.mxu1 %vm3149_vm3, %v2914_v23  ;;  %v2719_v29 = vpop.f32.mrb[19].mxu0  ;;  %2787 = vmatprep.mubr.msk.f32.mxu0 %vm3055_vm0, %v3056_v1 }
 0x20b   :  { %v1626_v30 = vmax.f32 %v1613_v28, 0.0  ;;  %v2726_v31 = vpop.f32.mrb[19].mxu1  ;;  %2794 = vmatprep.mubr.msk.f32.mxu1 %vm3055_vm0, %v3056_v1 }
 0x20c   :  { %2788 = vmatmul.mubr.msk.f32.vlgmr.msra.gmra.mrb[28].mxu0 %vm92_vm4, %v1625_v27 }
 0x20d   :  { %2795 = vmatmul.mubr.msk.f32.vlgmr.msra.gmra.mrb[28].mxu1 %vm92_vm4, %v1626_v30 }
 0x2cf   :  { %v1719_v0 = vpop.f32.mrb[20].mxu0 }
 0x2d0   :  { %2408 = vst.msk [vmem:[#allocation10] sm:$0x3] %vm2407_vm5, %v1719_v0  ;;  %v1795_v32 = vpop.f32.mrb[20].mxu1  ;;  %v2733_v2 = vpop.f32.mrb[21].mxu0 }
 0x2d1   :  { %2409 = vst.msk [vmem:[#allocation10 + $0x2] sm:$0x3] %vm2407_vm5, %v1795_v32  ;;  %v2740_v33 = vpop.f32.mrb[21].mxu1 }
 0x2d3   :  { %v1871_v34 = vpop.f32.mrb[22].mxu0 }
 0x2d4   :  { %2410 = vst.msk [vmem:[#allocation10 + $0x4] sm:$0x3] %vm2407_vm5, %v1871_v34  ;;  %v1947_v35 = vpop.f32.mrb[22].mxu1  ;;  %v2747_v36 = vpop.f32.mrb[23].mxu0 }
 0x2d5   :  { %2411 = vst.msk [vmem:[#allocation10 + $0x6] sm:$0x3] %vm2407_vm5, %v1947_v35  ;;  %v2754_v1 = vpop.f32.mrb[23].mxu1 }
 0x2d7   :  { %v2023_v37 = vpop.f32.mrb[24].mxu0 }
 0x2d8   :  { %2412 = vst.msk [vmem:[#allocation10 + $0x8] sm:$0x3] %vm2407_vm5, %v2023_v37  ;;  %v2099_v38 = vpop.f32.mrb[24].mxu1  ;;  %v2761_v39 = vpop.f32.mrb[25].mxu0 }
 0x2d9   :  { %2413 = vst.msk [vmem:[#allocation10 + $0xa] sm:$0x3] %vm2407_vm5, %v2099_v38  ;;  %v2768_v40 = vpop.f32.mrb[25].mxu1 }
 0x2db   :  { %v2175_v41 = vpop.f32.mrb[26].mxu0 }
 0x2dc   :  { %2414 = vst.msk [vmem:[#allocation10 + $0xc] sm:$0x3] %vm2407_vm5, %v2175_v41  ;;  %v2251_v42 = vpop.f32.mrb[26].mxu1  ;;  %v2775_v43 = vpop.f32.mrb[27].mxu0 }
 0x2dd   :  { %2415 = vst.msk [vmem:[#allocation10 + $0xe] sm:$0x3] %vm2407_vm5, %v2251_v42  ;;  %v2782_v44 = vpop.f32.mrb[27].mxu1 }
 0x2df   :  { %v2327_v45 = vpop.f32.mrb[28].mxu0 }
 0x2e0   :  { %2416 = vst.msk [vmem:[#allocation10 + $0x10] sm:$0x3] %vm2407_vm5, %v2327_v45  ;;  %v2403_v46 = vpop.f32.mrb[28].mxu1  ;;  %v2789_v47 = vpop.f32.mrb[29].mxu0 }
 0x2e1   :  { %2417 = vst.msk [vmem:[#allocation10 + $0x12] sm:$0x3] %vm2407_vm5, %v2403_v46  ;;  %v2796_v48 = vpop.f32.mrb[29].mxu1 }
 0x2e2   :  { %3029 = shalt.err (!%p3026_p8)
}
 0x2e3   :  { %s3030_s1 = scalar_lea.hbm %s3353_s4, 320 }
 0x2e4   :  { %p3031_p9 = scmp.ne.s32.totalorder %s3353_s4, %s3030_s1  ;;  %p3034_p10 = scmp.lt.u32.totalorder %s3030_s1, %s3353_s4 }
 0x2e6   :  { %p3036_p11 = pnand %p3034_p10, %p3031_p9 }
 0x2e8   :  { %3039 = shalt.err (!%p3036_p11)
}
 0x2e9   :  { %s3059_s18 = smov 32   ;;  %s3060_s19 = smov 2  }
 0x2ea   :  { %2429 = dma.vmem_to_hbm [thread:$0]  %s2424_s25, 320, %s3353_s4, [#allocation4], %s3059_s18, %s3059_s18, %s3060_s19  }
 0x2eb   :  { %3046 = dma.done.wait [#allocation4], 320  }
 0x2ec   :  { %3047 = vsyncadd [#allocation4], 4294966976 }
 0x2ed   :  { %2433 = vsyncpa [#allocation3], 1 }
 0x2ee   :  { %2434 = vsyncpa [#allocation6], 1 }
 0x2ef   :  { %2435 = vsyncpa [#allocation9], 1 }
 0x2f0   :  { %2436 = vsyncpa [#allocation4], 1 }

</bundles_post_ra>
